<compile_context>
chip_gen: v5e
topology: v5e:2x2
jax: 0.10.0
libtpu: 0.0.40
codegen_flags: <defaults>
</compile_context>

<pallas_src>
import functools

import jax
import jax.numpy as jnp
from jax.experimental import pallas as pl
from jax.experimental.pallas import tpu as pltpu

IN_DIM = 100      # layer1 in_features
HID_DIM = 50      # layer1 out_features
OUT_DIM = 1       # layer2 out_features
LANES = 128
HID_PAD = 128     # hidden dim zero-padded to one full lane group
MAX_TB = 8192     # max batch-tile rows (x tile <= 3.2 MiB f32; well under VMEM)


def _round_up(n, m):
    return ((n + m - 1) // m) * m


def _choose_tiling(B):
    """Lane-aligned batch tile size and 1-D grid size."""
    if B <= 1024:
        # single tile; latency path (grid=1)
        return _round_up(max(B, 1), LANES), 1
    # at least 2 tiles so both v7x TensorCores get work; cap tile at MAX_TB rows
    n = max(2, pl.cdiv(B, MAX_TB))
    if n % 2:
        n += 1
    tb = _round_up(pl.cdiv(B, n), LANES)
    grid = pl.cdiv(B, tb)
    return tb, grid


def _make_kernel(rows_per_tile):
    """Kernel for one batch tile of rows_per_tile*128 rows, lane-dense output."""

    def kernel(x_ref, w1_ref, b1_ref, w2_ref, b2_ref, o_ref):
        w1 = w1_ref[...]          # [IN_DIM, HID_PAD], compute dtype (bf16/f32), resident
        b1 = b1_ref[...]          # [1, HID_PAD] f32, resident
        w2 = w2_ref[...]          # [1, HID_PAD] f32, resident
        b2 = b2_ref[0]            # scalar from SMEM

        # Chunked, fused epilogue: 128 batch rows at a time; assemble up to 8
        # [1,128] result rows and store them as one (near-)full sublane group.
        for g in range(0, rows_per_tile, 8):
            group = min(8, rows_per_tile - g)
            rows = []
            for r in range(group):
                row0 = (g + r) * LANES
                # in-kernel cast to the MXU compute dtype (VPU converts; slack-free)
                xc = x_ref[row0:row0 + LANES, :].astype(w1.dtype)     # [128, IN_DIM]
                # layer 1 on the MXU, f32 accumulate
                h = jnp.dot(xc, w1, preferred_element_type=jnp.float32)
                h = jnp.maximum(h + b1, 0.0)                           # [128, HID_PAD] f32
                # layer 2 on the MXU, lane-dense: w2[1,H] . h[128,H]^T -> [1,128]
                row = jax.lax.dot_general(
                    w2, h,
                    dimension_numbers=(((1,), (1,)), ((), ())),
                    preferred_element_type=jnp.float32)
                rows.append(row + b2)
            block = rows[0] if group == 1 else jnp.concatenate(rows, axis=0)
            o_ref[g:g + group, :] = block

    return kernel


@functools.partial(jax.jit, static_argnames=("use_bf16",))
def singing_model_forward(x, w1, b1, w2, b2, *, use_bf16=True):
    """x: [B, 100] float -> [B, 1] f32.  Weights stored as [in, out] (vs torch)."""
    B = x.shape[0]
    tb, grid = _choose_tiling(B)
    rows_per_tile = tb // LANES
    out_rows = grid * rows_per_tile

    # Single-tile case: tiny pad (<=1023 rows) so the only block is in-bounds.
    # Multi-tile case stays pad-free; the ragged last tile is edge-handled and the
    # garbage rows are dropped by the [:B] slice below.
    if grid == 1 and B < tb:
        x = jnp.pad(x, ((0, tb - B), (0, 0)))

    compute_dtype = jnp.bfloat16 if use_bf16 else jnp.float32

    # Weights/biases are tiny: pad hidden dim to a full 128-lane group once here.
    w1_p = (jnp.zeros((IN_DIM, HID_PAD), jnp.float32)
            .at[:, :HID_DIM].set(w1.astype(jnp.float32))
            .astype(compute_dtype))
    b1_p = (jnp.zeros((1, HID_PAD), jnp.float32)
            .at[:, :HID_DIM].set(b1.reshape(1, HID_DIM).astype(jnp.float32)))
    w2_p = (jnp.zeros((1, HID_PAD), jnp.float32)
            .at[0, :HID_DIM].set(w2.reshape(HID_DIM).astype(jnp.float32)))
    b2_p = b2.reshape(OUT_DIM).astype(jnp.float32)

    cost = pl.CostEstimate(
        flops=2 * grid * tb * IN_DIM * HID_PAD + 2 * grid * tb * HID_PAD,
        transcendentals=0,
        bytes_accessed=(grid * tb * IN_DIM * x.dtype.itemsize
                        + w1_p.size * w1_p.dtype.itemsize
                        + out_rows * LANES * 4),
    )

    out_slab = pl.pallas_call(
        _make_kernel(rows_per_tile),
        out_shape=jax.ShapeDtypeStruct((out_rows, LANES), jnp.float32),
        grid=(grid,),
        in_specs=[
            pl.BlockSpec((tb, IN_DIM), lambda i: (i, 0)),        # x: tiled, pipelined
            pl.BlockSpec((IN_DIM, HID_PAD), lambda i: (0, 0)),   # W1: resident
            pl.BlockSpec((1, HID_PAD), lambda i: (0, 0)),        # b1: resident
            pl.BlockSpec((1, HID_PAD), lambda i: (0, 0)),        # w2 row: resident
            pl.BlockSpec(memory_space=pltpu.MemorySpace.SMEM),   # b2: SMEM scalar
        ],
        out_specs=pl.BlockSpec((rows_per_tile, LANES), lambda i: (i, 0)),
        compiler_params=pltpu.CompilerParams(
            dimension_semantics=("parallel",)),
        cost_estimate=cost,
    )(x, w1_p, b1_p, w2_p, b2_p)

    # lane-dense slab (global row = i*tb + g*128 + lane) -> [B, 1]
    return out_slab.reshape(-1)[:B].reshape(B, OUT_DIM)


def init_params(key):
    """PyTorch-like init; weights stored transposed ([in, out])."""
    k1, k2, k3, k4 = jax.random.split(key, 4)
    lim1 = 1.0 / (IN_DIM ** 0.5)
    lim2 = 1.0 / (HID_DIM ** 0.5)
    w1 = jax.random.uniform(k1, (IN_DIM, HID_DIM), jnp.float32, -lim1, lim1)
    b1 = jax.random.uniform(k2, (HID_DIM,), jnp.float32, -lim1, lim1)
    w2 = jax.random.uniform(k3, (HID_DIM, OUT_DIM), jnp.float32, -lim2, lim2)
    b2 = jax.random.uniform(k4, (OUT_DIM,), jnp.float32, -lim2, lim2)
    return w1, b1, w2, b2


def _reference(x, w1, b1, w2, b2, use_bf16=True):
    """Pure-JAX reference with the same operand rounding as the kernel."""
    if use_bf16:
        x = x.astype(jnp.bfloat16).astype(jnp.float32)
        w1 = w1.astype(jnp.bfloat16).astype(jnp.float32)
    h = jnp.maximum(
        jax.lax.dot(x, w1, precision=jax.lax.Precision.HIGHEST) + b1, 0.0)
    return jnp.sum(h * w2.reshape(1, HID_DIM), axis=-1, keepdims=True) + b2


if __name__ == "__main__":
    key = jax.random.PRNGKey(0)
    kx, kp, kx2 = jax.random.split(key, 3)
    w1, b1, w2, b2 = init_params(kp)

    # small batch (single tile, grid = 1)
    B_small = 16
    x_small = jax.random.normal(kx, (B_small, IN_DIM), jnp.float32)
    out_small = jax.block_until_ready(
        singing_model_forward(x_small, w1, b1, w2, b2))
    ref_small = _reference(x_small, w1, b1, w2, b2)
    assert out_small.shape == (B_small, OUT_DIM)
    assert jnp.allclose(out_small, ref_small, rtol=1e-4, atol=1e-4)

    # larger batch exercising the tiled, pipelined, megacore-parallel path
    B_big = 1300  # -> tb=768, grid=2, ragged (pad-free) last tile
    x_big = jax.random.normal(kx2, (B_big, IN_DIM), jnp.float32)
    out_big = jax.block_until_ready(
        singing_model_forward(x_big, w1, b1, w2, b2))
    ref_big = _reference(x_big, w1, b1, w2, b2)
    assert out_big.shape == (B_big, OUT_DIM)
    assert jnp.allclose(out_big, ref_big, rtol=1e-4, atol=1e-4)

    print("KERNEL_OK")
</pallas_src>

<mosaic_0001>
module attributes {stable_mosaic.version = 11 : i64} {
  func.func @kernel(%arg0: i32, %arg1: memref<128x100xf32, #tpu.memory_space<vmem>>, %arg2: memref<100x128xbf16, #tpu.memory_space<vmem>>, %arg3: memref<1x128xf32, #tpu.memory_space<vmem>>, %arg4: memref<1x128xf32, #tpu.memory_space<vmem>>, %arg5: memref<1xf32, #tpu.memory_space<smem>>, %arg6: memref<1x128xf32, #tpu.memory_space<vmem>>) attributes {dimension_semantics = [#tpu.dimension_semantics<parallel>], iteration_bounds = array<i64: 1>, scalar_prefetch = 0 : i64, scratch_operands = 0 : i64, tpu.core_type = #tpu.core_type<tc>, window_params = [{transform_indices = @transform_0, window_bounds = array<i64: 128, 100>}, {pipeline_mode = #tpu.pipeline_mode<synchronous>, transform_indices = @transform_1, window_bounds = array<i64: 100, 128>}, {pipeline_mode = #tpu.pipeline_mode<synchronous>, transform_indices = @transform_2, window_bounds = array<i64: 1, 128>}, {pipeline_mode = #tpu.pipeline_mode<synchronous>, transform_indices = @transform_3, window_bounds = array<i64: 1, 128>}, {transform_indices = @transform_4, window_bounds = array<i64: 1>}, {transform_indices = @transform_5, window_bounds = array<i64: 1, 128>}]} {
    %c0 = arith.constant 0 : index
    %c0_0 = arith.constant 0 : index
    %0 = vector.load %arg2[%c0, %c0_0] : memref<100x128xbf16, #tpu.memory_space<vmem>>, vector<100x128xbf16>
    %c0_1 = arith.constant 0 : index
    %c0_2 = arith.constant 0 : index
    %1 = vector.load %arg3[%c0_1, %c0_2] : memref<1x128xf32, #tpu.memory_space<vmem>>, vector<1x128xf32>
    %c0_3 = arith.constant 0 : index
    %c0_4 = arith.constant 0 : index
    %2 = vector.load %arg4[%c0_3, %c0_4] : memref<1x128xf32, #tpu.memory_space<vmem>>, vector<1x128xf32>
    %c0_5 = arith.constant 0 : index
    %3 = memref.load %arg5[%c0_5] : memref<1xf32, #tpu.memory_space<smem>>
    %c0_6 = arith.constant 0 : index
    %c0_7 = arith.constant 0 : index
    %4 = vector.load %arg1[%c0_6, %c0_7] : memref<128x100xf32, #tpu.memory_space<vmem>>, vector<128x100xf32>
    %5 = arith.truncf %4 : vector<128x100xf32> to vector<128x100xbf16>
    %cst = arith.constant dense<0.000000e+00> : vector<128x128xf32>
    %6 = tpu.matmul %5, %0, %cst {dimension_numbers = #tpu.dot_dimension_numbers<[1], [0], [0], [1], [0, 0, 1, 1], [], []>} : vector<128x100xbf16>, vector<100x128xbf16>, vector<128x128xf32> -> vector<128x128xf32>
    %7 = vector.broadcast %1 : vector<1x128xf32> to vector<128x128xf32>
    %8 = arith.addf %6, %7 : vector<128x128xf32>
    %cst_8 = arith.constant 0.000000e+00 : f32
    %9 = vector.broadcast %cst_8 : f32 to vector<128x128xf32>
    %10 = arith.maximumf %8, %9 : vector<128x128xf32>
    %cst_9 = arith.constant dense<0.000000e+00> : vector<1x128xf32>
    %11 = tpu.matmul %2, %10, %cst_9 {dimension_numbers = #tpu.dot_dimension_numbers<[1], [1], [0], [0], [0, 0, 1, 0], [], []>} : vector<1x128xf32>, vector<128x128xf32>, vector<1x128xf32> -> vector<1x128xf32>
    %12 = vector.broadcast %3 : f32 to vector<1x128xf32>
    %13 = arith.addf %11, %12 : vector<1x128xf32>
    %c0_10 = arith.constant 0 : index
    %c0_11 = arith.constant 0 : index
    %14 = vector.load %arg6[%c0_10, %c0_11] : memref<1x128xf32, #tpu.memory_space<vmem>>, vector<1x128xf32>
    tpu.vector_store %arg6[%c0_10, %c0_11], %13 {strides = array<i32>} : memref<1x128xf32, #tpu.memory_space<vmem>>, vector<1x128xf32>,
    return
  }
  func.func @transform_0(%arg0: i32) -> (i32, i32) {
    %c0_i32 = arith.constant 0 : i32
    %c0_i32_0 = arith.constant 0 : i32
    return %arg0, %c0_i32 : i32, i32
  }
  func.func @transform_1(%arg0: i32) -> (i32, i32) {
    %c0_i32 = arith.constant 0 : i32
    %c0_i32_0 = arith.constant 0 : i32
    %c0_i32_1 = arith.constant 0 : i32
    return %c0_i32, %c0_i32_0 : i32, i32
  }
  func.func @transform_2(%arg0: i32) -> (i32, i32) {
    %c0_i32 = arith.constant 0 : i32
    %c0_i32_0 = arith.constant 0 : i32
    %c0_i32_1 = arith.constant 0 : i32
    return %c0_i32, %c0_i32_0 : i32, i32
  }
  func.func @transform_3(%arg0: i32) -> (i32, i32) {
    %c0_i32 = arith.constant 0 : i32
    %c0_i32_0 = arith.constant 0 : i32
    %c0_i32_1 = arith.constant 0 : i32
    return %c0_i32, %c0_i32_0 : i32, i32
  }
  func.func @transform_4(%arg0: i32) -> i32 {
    %c0_i32 = arith.constant 0 : i32
    %c0_i32_0 = arith.constant 0 : i32
    return %c0_i32 : i32
  }
  func.func @transform_5(%arg0: i32) -> (i32, i32) {
    %c0_i32 = arith.constant 0 : i32
    %c0_i32_0 = arith.constant 0 : i32
    return %arg0, %c0_i32 : i32, i32
  }
}

</mosaic_0001>

<bundles_post_ra>
// kernel: singing_model_forward.1
= control target key start
LH: loop header
LB: loop body
LE: loop exit
PB: predicated region body
PF: predicated region fallthrough
CT: control target
= control target key end

     0   :  { %vm129_vm0 = vcmask 1041408   ;;  %vm104_vm1 = vcmask 818176   ;;  %s396_s1 = inlined_call_operand.vmem [shape: bf16[100,128], index: 1, kind: input, shape index: {}]   ;;  %s397_s2 = inlined_call_operand.vmem [shape: f32[1,128], index: 2, kind: input, shape index: {}]   ;;  %s398_s0 = inlined_call_operand.vmem [shape: f32[128,100], index: 0, kind: input, shape index: {}]   ;;  %s399_s3 = inlined_call_operand.vmem [shape: f32[1,128], index: 3, kind: input, shape index: {}]   ;;  %s400_s4 = inlined_call_operand.<no memory space> [shape: f32[1], index: 4, kind: input, shape index: {}]   ;;  %s401_s5 = inlined_call_operand.vmem [shape: f32[1,128], index: 5, kind: output, shape index: {}]  }
   0x1   :  { %v34_v0 = vld [vmem:[%s396_s1 + $0x30] sm:$0x3]  ;;  %v261_v4 = vld [vmem:[%s396_s1 + $0x28] sm:$0xff]  ;;  %v260_v5 = vld [vmem:[%s396_s1 + $0x20] sm:$0xff] }
   0x2   :  { %v90_v1 = vunpack.c.l.b16 %v34_v0  ;;  %v259_v6 = vld [vmem:[%s396_s1 + $0x18] sm:$0xff]  ;;  %v258_v7 = vld [vmem:[%s396_s1 + $0x10] sm:$0xff]  ;;  %v257_v8 = vld [vmem:[%s396_s1 + $0x8] sm:$0xff] }
   0x3   :  { %v256_v9 = vld [vmem:[%s396_s1] sm:$0xff]  ;;  %v44_v10 = vld [vmem:[%s398_s0 + $0x30] sm:$0xff]  ;;  %v45_v11 = vld [vmem:[%s398_s0 + $0x38] sm:$0xff] }
   0x4   :  { %v97_v2 = vpack.c.b16 %v90_v1, %v90_v1  ;;  %v50_v12 = vld [vmem:[%s398_s0 + $0x60] sm:$0xff]  ;;  %v51_v13 = vld [vmem:[%s398_s0 + $0x68] sm:$0xff]  ;;  %v57_v16 = vpack.c.bf16 %v45_v11, %v44_v10  ;;  %v52_v21 = vld [vmem:[%s398_s0 + $0x70] sm:$0xff] }
   0x5   :  { %v38_v14 = vld [vmem:[%s398_s0] sm:$0xff]  ;;  %v39_v15 = vld [vmem:[%s398_s0 + $0x8] sm:$0xff]  ;;  %v60_v17 = vpack.c.bf16 %v51_v13, %v50_v12  ;;  %v53_v22 = vld [vmem:[%s398_s0 + $0x78] sm:$0xff] }
   0x6   :  { %v131_v3 = vsel %vm129_vm0, %v97_v2, 0  ;;  %v54_v18 = vpack.c.bf16 %v39_v15, %v38_v14  ;;  %v46_v19 = vld [vmem:[%s398_s0 + $0x40] sm:$0xff]  ;;  %v47_v20 = vld [vmem:[%s398_s0 + $0x48] sm:$0xff]  ;;  %v40_v23 = vld [vmem:[%s398_s0 + $0x10] sm:$0xff]  ;;  %v61_v26 = vpack.c.bf16 %v53_v22, %v52_v21 }
   0x7   :  { %262 = vmatpush.bf16.msra.mxu2 %v131_v3  ;;  %263 = vmatpush.bf16.msra.mxu3 %v131_v3  ;;  %v41_v24 = vld [vmem:[%s398_s0 + $0x18] sm:$0xff]  ;;  %v58_v25 = vpack.c.bf16 %v47_v20, %v46_v19  ;;  %v48_v28 = vld [vmem:[%s398_s0 + $0x50] sm:$0xff]  ;;  %v42_v30 = vld [vmem:[%s398_s0 + $0x20] sm:$0xff]  ;;  %v198_v20 = vstv %s400_s4 }
   0x8   :  { %134 = vmatpush.bf16.msra.mxu0 %v131_v3  ;;  %v55_v27 = vpack.c.bf16 %v41_v24, %v40_v23  ;;  %v49_v29 = vld [vmem:[%s398_s0 + $0x58] sm:$0xff]  ;;  %v43_v31 = vld [vmem:[%s398_s0 + $0x28] sm:$0xff]  ;;  %v276_v42 = vld [vmem:[%s397_s2] ss:$0 sm:$0xff] }
   0x9   :  { %v59_v32 = vpack.c.bf16 %v49_v29, %v48_v28  ;;  %v56_v33 = vpack.c.bf16 %v43_v31, %v42_v30  ;;  %v36_v19 = vld [vmem:[%s399_s3] sm:$0x1] }
   0xb   :  { %264 = vmatpush.bf16.msra.mxu2 %v261_v4  ;;  %265 = vmatpush.bf16.msra.mxu3 %v261_v4 }
   0xc   :  { %135 = vmatpush.bf16.msra.mxu0 %v261_v4 }
   0xf   :  { %266 = vmatpush.bf16.msra.mxu2 %v260_v5  ;;  %267 = vmatpush.bf16.msra.mxu3 %v260_v5 }
  0x10   :  { %136 = vmatpush.bf16.msra.mxu0 %v260_v5 }
  0x13   :  { %268 = vmatpush.bf16.msra.mxu2 %v259_v6  ;;  %269 = vmatpush.bf16.msra.mxu3 %v259_v6 }
  0x14   :  { %137 = vmatpush.bf16.msra.mxu0 %v259_v6 }
  0x17   :  { %270 = vmatpush.bf16.msra.mxu2 %v258_v7  ;;  %271 = vmatpush.bf16.msra.mxu3 %v258_v7 }
  0x18   :  { %138 = vmatpush.bf16.msra.mxu0 %v258_v7 }
  0x1b   :  { %272 = vmatpush.bf16.msra.mxu2 %v257_v8  ;;  %273 = vmatpush.bf16.msra.mxu3 %v257_v8 }
  0x1c   :  { %139 = vmatpush.bf16.msra.mxu0 %v257_v8 }
  0x1f   :  { %274 = vmatpush.bf16.msra.mxu2 %v256_v9  ;;  %275 = vmatpush.bf16.msra.mxu3 %v256_v9 }
  0x20   :  { %140 = vmatpush.bf16.msra.mxu0 %v256_v9 }
  0x22   :  { %251 = vmatmul.msk.bf16.vlgmr.msra.gmra.mxu2 %vm104_vm1, %v57_v16  ;;  %254 = vmatmul.msk.bf16.vlgmr.msra.gmra.mxu3 %vm104_vm1, %v60_v17 }
  0x23   :  { %248 = vmatmul.msk.bf16.vlgmr.msra.gmra.mxu0 %vm104_vm1, %v54_v18 }
  0x32   :  { %252 = vmatmul.msk.bf16.gmra.mxu2 %vm104_vm1, %v58_v25  ;;  %255 = vmatmul.msk.bf16.gmra.mxu3 %vm104_vm1, %v61_v26 }
  0x33   :  { %249 = vmatmul.msk.bf16.gmra.mxu0 %vm104_vm1, %v55_v27 }
  0x42   :  { %253 = vmatmul.msk.bf16.gmra.mxu2 %vm104_vm1, %v59_v32 }
  0x43   :  { %250 = vmatmul.msk.bf16.gmra.mxu0 %vm104_vm1, %v56_v33 }
  0xa0   :  { %v142_v38 = vpop.f32.mrf.mxu0 }
  0xa1   :  { %v143_v16 = vadd.f32 %v276_v42, %v142_v38 }
  0xa3   :  { %v182_v18 = vmax.f32 %v143_v16, 0.0 }
  0xa5   :  { %v157_v34 = vpop.f32.mrf.mxu2  ;;  %v172_v35 = vpop.f32.mrf.mxu3 }
  0xa6   :  { %v173_v52 = vadd.f32 %v276_v42, %v172_v35  ;;  %v158_v3 = vadd.f32 %v276_v42, %v157_v34 }
  0xa8   :  { %v144_v41 = vpop.f32.mrf.mxu0  ;;  %v194_v54 = vmax.f32 %v173_v52, 0.0  ;;  %v188_v6 = vmax.f32 %v158_v3, 0.0 }
  0xa9   :  { %v145_v14 = vadd.f32 %v276_v42, %v144_v41 }
  0xab   :  { %v183_v17 = vmax.f32 %v145_v14, 0.0 }
  0xad   :  { %v159_v36 = vpop.f32.mrf.mxu2  ;;  %v174_v37 = vpop.f32.mrf.mxu3 }
  0xae   :  { %v175_v49 = vadd.f32 %v276_v42, %v174_v37  ;;  %v160_v1 = vadd.f32 %v276_v42, %v159_v36 }
  0xb0   :  { %v147_v48 = vpop.f32.mrf.mxu0  ;;  %v195_v53 = vmax.f32 %v175_v49, 0.0  ;;  %v189_v4 = vmax.f32 %v160_v1, 0.0 }
  0xb1   :  { %v148_v12 = vadd.f32 %v276_v42, %v147_v48 }
  0xb3   :  { %v184_v15 = vmax.f32 %v148_v12, 0.0 }
  0xb5   :  { %v162_v39 = vpop.f32.mrf.mxu2  ;;  %v177_v40 = vpop.f32.mrf.mxu3 }
  0xb6   :  { %v178_v46 = vadd.f32 %v276_v42, %v177_v40  ;;  %v163_v63 = vadd.f32 %v276_v42, %v162_v39 }
  0xb8   :  { %v196_v50 = vmax.f32 %v178_v46, 0.0  ;;  %v149_v55 = vpop.f32.mrf.mxu0  ;;  %v190_v2 = vmax.f32 %v163_v63, 0.0 }
  0xb9   :  { %v150_v10 = vadd.f32 %v276_v42, %v149_v55 }
  0xbb   :  { %v185_v13 = vmax.f32 %v150_v10, 0.0 }
  0xbd   :  { %v164_v43 = vpop.f32.mrf.mxu2  ;;  %v179_v44 = vpop.f32.mrf.mxu3 }
  0xbe   :  { %v180_v45 = vadd.f32 %v276_v42, %v179_v44  ;;  %v165_v60 = vadd.f32 %v276_v42, %v164_v43 }
  0xc0   :  { %v197_v47 = vmax.f32 %v180_v45, 0.0  ;;  %v152_v62 = vpop.f32.mrf.mxu0  ;;  %v191_v0 = vmax.f32 %v165_v60, 0.0 }
  0xc1   :  { %v153_v8 = vadd.f32 %v276_v42, %v152_v62 }
  0xc2   :  { %199 = vmatpush.xpose.msra.mxu1 %v197_v47 }
  0xc3   :  { %v186_v11 = vmax.f32 %v153_v8, 0.0 }
  0xc5   :  { %v167_v51 = vpop.f32.mrf.mxu2 }
  0xc6   :  { %200 = vmatpush.xpose.msra.mxu1 %v196_v50  ;;  %v168_v58 = vadd.f32 %v276_v42, %v167_v51 }
  0xc8   :  { %v192_v61 = vmax.f32 %v168_v58, 0.0  ;;  %v154_v5 = vpop.f32.mrf.mxu0 }
  0xc9   :  { %v155_v7 = vadd.f32 %v276_v42, %v154_v5 }
  0xca   :  { %201 = vmatpush.xpose.msra.mxu1 %v195_v53 }
  0xcb   :  { %v187_v9 = vmax.f32 %v155_v7, 0.0 }
  0xcd   :  { %v169_v56 = vpop.f32.mrf.mxu2 }
  0xce   :  { %v170_v57 = vadd.f32 %v276_v42, %v169_v56  ;;  %202 = vmatpush.xpose.msra.mxu1 %v194_v54 }
  0xd0   :  { %v193_v59 = vmax.f32 %v170_v57, 0.0 }
  0xd2   :  { %203 = vmatpush.xpose.msra.mxu1 %v193_v59 }
  0xd6   :  { %204 = vmatpush.xpose.msra.mxu1 %v192_v61 }
  0xda   :  { %205 = vmatpush.xpose.msra.mxu1 %v191_v0 }
  0xde   :  { %206 = vmatpush.xpose.msra.mxu1 %v190_v2 }
  0xe2   :  { %207 = vmatpush.xpose.msra.mxu1 %v189_v4 }
  0xe6   :  { %208 = vmatpush.xpose.msra.mxu1 %v188_v6 }
  0xea   :  { %209 = vmatpush.xpose.msra.mxu1 %v187_v9 }
  0xee   :  { %210 = vmatpush.xpose.msra.mxu1 %v186_v11 }
  0xf2   :  { %211 = vmatpush.xpose.msra.mxu1 %v185_v13 }
  0xf6   :  { %212 = vmatpush.xpose.msra.mxu1 %v184_v15 }
  0xfa   :  { %213 = vmatpush.xpose.msra.mxu1 %v183_v17 }
  0xfe   :  { %214 = vmatpush.xpose.msra.mxu1 %v182_v18 }
 0x101   :  { %215 = vmatmul.f32.vlgmr.msra.gmra.mxu1 %v36_v19 }
 0x17e   :  { %v216_v21 = vpop.f32.mrf.mxu1 }
 0x17f   :  { %v217_v22 = vadd.f32 %v216_v21, %v198_v20 }
 0x181   :  { %219 = vst [vmem:[%s401_s5] sm:$0x1] %v217_v22 }

</bundles_post_ra>
